<compile_context>
chip_gen: v7x
topology: tpu7x:2x2x1
jax: 0.10.0
libtpu: 0.0.40
codegen_flags: <defaults>
</compile_context>

<pallas_src>
import jax
import jax.numpy as jnp
from jax.experimental import pallas as pl
from jax.experimental.pallas import tpu as pltpu


def _kl_div_rowsum_kernel(results_ref, targets_ref, out_ref):
    """One (block_b, C) tile of raw logits -> per-row KL contributions (block_b, 1)."""
    x = results_ref[...].astype(jnp.float32)   # (bb, C) raw logits
    t = targets_ref[...].astype(jnp.float32)   # (bb, C) or (1, C) log-probabilities
    et = jnp.exp(t)                            # (bb, C) or (1, C)  [EUP]

    # Stable log-sum-exp pieces, everything relative to the per-row max.
    m = jnp.max(x, axis=1, keepdims=True)                            # (bb, 1) [XLU]
    xm = x - m                                                       # (bb, C)
    lse_m = jnp.log(jnp.sum(jnp.exp(xm), axis=1, keepdims=True))     # (bb, 1)

    # sum_c exp(t) * (t - logp)  ==  sum_c exp(t)*(t - xm) + lse_m * sum_c exp(t)
    s1 = jnp.sum(et * (t - xm), axis=1, keepdims=True)               # (bb, 1)
    s2 = jnp.sum(et, axis=1, keepdims=True)                          # (bb, 1) or (1, 1)
    out_ref[...] = s1 + lse_m * s2


def _choose_block_b(B, C, itemsize, sublane):
    """Largest batch tile that keeps the double-buffered pipeline under ~16 MiB."""
    # footprint ~= 2 operands * 2 buffers * block_b * C * itemsize
    budget = 16 * 1024 * 1024
    bb = budget // (4 * C * itemsize)
    bb = min(bb, 1024)                                     # past ~1K rows: no extra BW
    b_pad = ((B + sublane - 1) // sublane) * sublane
    bb = min(bb, b_pad)
    bb = max(sublane, (bb // sublane) * sublane)
    return int(bb)


def kl_div_loss(results, targets, block_b=None):
    """Pallas equivalent of KLdivLoss.forward(results, targets).

    results: (B, C) raw prediction logits (before softmax).
    targets: (B, C) or (C,) log-probabilities (log_target=True). A (C,) target is
             broadcast across the batch inside the kernel (no HBM materialization).
    Returns a float32 scalar.
    """
    B, C = results.shape
    broadcast_targets = targets.ndim == 1
    if broadcast_targets:
        targets = targets.reshape(1, C)

    itemsize = jnp.dtype(results.dtype).itemsize
    sublane = max(8, 32 // itemsize)  # 8 for f32, 16 for bf16, 32 for int8/fp8

    if block_b is None:
        block_b = _choose_block_b(B, C, itemsize, sublane)
    else:
        block_b = max(sublane, (int(block_b) // sublane) * sublane)

    # TODO(synk): for extremely large C (block_b*C*itemsize*4 > VMEM even at
    # block_b == sublane) a class-axis grid with an online-logsumexp carry would
    # be needed; typical num_classes fit a full row comfortably.

    # Pad the batch so it tiles evenly; padded rows are sliced off before the sum.
    Bp = ((B + block_b - 1) // block_b) * block_b
    if Bp != B:
        results = jnp.pad(results, ((0, Bp - B), (0, 0)))
        if not broadcast_targets:
            targets = jnp.pad(targets, ((0, Bp - B), (0, 0)))

    grid = (Bp // block_b,)

    if broadcast_targets:
        tgt_spec = pl.BlockSpec((1, C), lambda i: (0, 0))
        tgt_rows = 1
    else:
        tgt_spec = pl.BlockSpec((block_b, C), lambda i: (i, 0))
        tgt_rows = Bp

    tgt_itemsize = jnp.dtype(targets.dtype).itemsize
    cost = pl.CostEstimate(
        flops=int(6 * Bp * C),                       # sub/mul/add chains per element
        transcendentals=int(2 * Bp * C + Bp),        # exp(t), exp(x-m), log per row
        bytes_accessed=int(Bp * C * itemsize + tgt_rows * C * tgt_itemsize + Bp * 4),
    )

    per_row = pl.pallas_call(
        _kl_div_rowsum_kernel,
        out_shape=jax.ShapeDtypeStruct((Bp, 1), jnp.float32),
        grid=grid,
        in_specs=[
            pl.BlockSpec((block_b, C), lambda i: (i, 0)),
            tgt_spec,
        ],
        out_specs=pl.BlockSpec((block_b, 1), lambda i: (i, 0)),
        compiler_params=pltpu.CompilerParams(
            dimension_semantics=("parallel",),
            vmem_limit_bytes=48 * 1024 * 1024,
        ),
        cost_estimate=cost,
    )(results, targets)

    # Final reduction (pairwise, f32) + 'batchmean' division in the wrapper.
    return jnp.sum(per_row[:B, 0]) / jnp.float32(B)


def _reference(results, targets):
    """Pure-JAX reference matching the PyTorch module exactly."""
    x = results.astype(jnp.float32)
    t = targets.astype(jnp.float32)
    if t.ndim == 1:
        t = jnp.broadcast_to(t[None, :], x.shape)
    logp = jax.nn.log_softmax(x, axis=1)
    return jnp.sum(jnp.exp(t) * (t - logp)) / x.shape[0]


if __name__ == "__main__":
    # The module has no learnable parameters (LogSoftmax + KLDivLoss only).
    key = jax.random.PRNGKey(0)
    k_res, k_tgt = jax.random.split(key)

    B, C = 16, 128  # small (batch, num_classes) consistent with the module's forward
    results = jax.random.normal(k_res, (B, C), dtype=jnp.float32)
    # Targets are log-probabilities (log_target=True): log_softmax of random logits.
    targets_2d = jax.nn.log_softmax(
        jax.random.normal(k_tgt, (B, C), dtype=jnp.float32), axis=1
    )
    targets_1d = targets_2d[0]  # (C,) target, broadcast path (matches module docstring)

    ok = True
    for tgt in (targets_2d, targets_1d):
        loss = jax.block_until_ready(kl_div_loss(results, tgt, block_b=8))
        ref = _reference(results, tgt)
        ok &= bool(jnp.allclose(loss, ref, rtol=1e-5, atol=1e-5))

    # Also exercise the auto-chosen tile path and an uneven-batch (padded) path.
    loss = jax.block_until_ready(kl_div_loss(results, targets_2d))
    ok &= bool(jnp.allclose(loss, _reference(results, targets_2d), rtol=1e-5, atol=1e-5))

    results_odd = results[:13]
    targets_odd = targets_2d[:13]
    loss = jax.block_until_ready(kl_div_loss(results_odd, targets_odd, block_b=8))
    ok &= bool(jnp.allclose(loss, _reference(results_odd, targets_odd), rtol=1e-5, atol=1e-5))

    assert ok
    print("KERNEL_OK")
</pallas_src>

<mosaic_0001>
module attributes {stable_mosaic.version = 11 : i64} {
  func.func @_kl_div_rowsum_kernel(%arg0: i32, %arg1: memref<8x128xf32, #tpu.memory_space<vmem>>, %arg2: memref<8x128xf32, #tpu.memory_space<vmem>>, %arg3: memref<8x1xf32, #tpu.memory_space<vmem>>) attributes {dimension_semantics = [#tpu.dimension_semantics<parallel>], iteration_bounds = array<i64: 2>, scalar_prefetch = 0 : i64, scratch_operands = 0 : i64, tpu.core_type = #tpu.core_type<tc>, window_params = [{transform_indices = @transform_0, window_bounds = array<i64: 8, 128>}, {transform_indices = @transform_1, window_bounds = array<i64: 8, 128>}, {transform_indices = @transform_2, window_bounds = array<i64: 8, 1>}]} {
    %c0 = arith.constant 0 : index
    %c0_0 = arith.constant 0 : index
    %0 = vector.load %arg1[%c0, %c0_0] : memref<8x128xf32, #tpu.memory_space<vmem>>, vector<8x128xf32>
    %c0_1 = arith.constant 0 : index
    %c0_2 = arith.constant 0 : index
    %1 = vector.load %arg2[%c0_1, %c0_2] : memref<8x128xf32, #tpu.memory_space<vmem>>, vector<8x128xf32>
    %2 = math.exp %1 : vector<8x128xf32>
    %cst = arith.constant dense<0xFF800000> : vector<8xf32>
    %3 = vector.multi_reduction <maximumf>, %0, %cst [1] : vector<8x128xf32> to vector<8xf32>
    %4 = vector.shape_cast %3 : vector<8xf32> to vector<8x1xf32>
    %5 = vector.broadcast %4 : vector<8x1xf32> to vector<8x128xf32>
    %6 = arith.subf %0, %5 : vector<8x128xf32>
    %7 = math.exp %6 : vector<8x128xf32>
    %cst_3 = arith.constant dense<0.000000e+00> : vector<8xf32>
    %8 = vector.multi_reduction <add>, %7, %cst_3 [1] : vector<8x128xf32> to vector<8xf32>
    %9 = vector.shape_cast %8 : vector<8xf32> to vector<8x1xf32>
    %10 = math.log %9 : vector<8x1xf32>
    %11 = arith.subf %1, %6 : vector<8x128xf32>
    %12 = arith.mulf %2, %11 : vector<8x128xf32>
    %cst_4 = arith.constant dense<0.000000e+00> : vector<8xf32>
    %13 = vector.multi_reduction <add>, %12, %cst_4 [1] : vector<8x128xf32> to vector<8xf32>
    %14 = vector.shape_cast %13 : vector<8xf32> to vector<8x1xf32>
    %cst_5 = arith.constant dense<0.000000e+00> : vector<8xf32>
    %15 = vector.multi_reduction <add>, %2, %cst_5 [1] : vector<8x128xf32> to vector<8xf32>
    %16 = vector.shape_cast %15 : vector<8xf32> to vector<8x1xf32>
    %17 = arith.mulf %10, %16 : vector<8x1xf32>
    %18 = arith.addf %14, %17 : vector<8x1xf32>
    %c0_6 = arith.constant 0 : index
    %c0_7 = arith.constant 0 : index
    %19 = vector.load %arg3[%c0_6, %c0_7] : memref<8x1xf32, #tpu.memory_space<vmem>>, vector<8x1xf32>
    tpu.vector_store %arg3[%c0_6, %c0_7], %18 {strides = array<i32>} : memref<8x1xf32, #tpu.memory_space<vmem>>, vector<8x1xf32>,
    return
  }
  func.func @transform_0(%arg0: i32) -> (i32, i32) {
    %c0_i32 = arith.constant 0 : i32
    %c0_i32_0 = arith.constant 0 : i32
    return %arg0, %c0_i32 : i32, i32
  }
  func.func @transform_1(%arg0: i32) -> (i32, i32) {
    %c0_i32 = arith.constant 0 : i32
    %c0_i32_0 = arith.constant 0 : i32
    return %arg0, %c0_i32 : i32, i32
  }
  func.func @transform_2(%arg0: i32) -> (i32, i32) {
    %c0_i32 = arith.constant 0 : i32
    %c0_i32_0 = arith.constant 0 : i32
    return %arg0, %c0_i32 : i32, i32
  }
}

</mosaic_0001>

<bundles_post_ra>
// kernel: tpu_custom_call.1
= control target key start
LH: loop header
LB: loop body
LE: loop exit
PB: predicated region body
PF: predicated region fallthrough
CT: control target
= control target key end

     0   :  { %7 = vsyncpa [#allocation3], 0  ;;  %s641_s0 = inlined_call_operand.hbm [shape: f32[16,128], index: 0, kind: input, shape index: {}]   ;;  %s642_s1 = inlined_call_operand.hbm [shape: f32[16,128], index: 1, kind: input, shape index: {}]   ;;  %s643_s2 = inlined_call_operand.vmem [shape: f32[16,1], index: 2, kind: output, shape index: {}]  }
   0x1   :  { %9 = vsyncpa [#allocation3 + $0x1], 0 }
   0x2   :  { %10 = vsyncpa [#allocation5], 0 }
   0x3   :  { %12 = vsyncpa [#allocation5 + $0x1], 0  ;;  %s487_s9 = smov 0   ;;  %s489_s10 = smov 0  }
   0x4   :  { %s491_s11 = smov 0   ;;  %s493_s12 = smov 0  }
   0x5 LB: > { %s506_s13 = sadd.s32 4294967295, %s468_s12   ;;  %s509_s14 = sadd.s32 1, %s468_s12   ;;  %s468_s12 = sphi %s493_s12, %s655_s12   ;;  %s464_s11 = sphi %s491_s11, %s654_s11   ;;  %s460_s10 = sphi %s489_s10, %s653_s10   ;;  %s456_s9 = sphi %s487_s9, %s652_s9  }
   0x6   : > { %s22_s15 = ssub.s32 %s468_s12, %s509_s14  ;;  %s25_s16 = sadd.s32 1, %s464_s11 }
   0x7   : > { %p23_p0 = scmp.eq.s32.totalorder %s22_s15, 0  ;;  %p32_p1 = scmp.ne.s32.totalorder %s464_s11, %s460_s10 }
   0x8   : > { %p33_p2 = scmp.eq.s32.totalorder %s468_s12, 0  ;;  %p38_p3 = scmp.ne.s32.totalorder %s460_s10, %s456_s9 }
   0x9   : > { %s519_s17 = scalar_select %p23_p0, %s464_s11, %s25_s16  }
   0xa   : > { %p34_p4 = por %p33_p2, %p32_p1  ;;  %p39_p5 = scmp.eq.s32.totalorder %s506_s13, 0 }
   0xb   : > { %p331_p6 = scmp.lt.s32.totalorder %s468_s12, 2  ;;  %s528_s19 = sand.u32 1, %s464_s11  }
   0xc   : > { %p523_p7 = por %p39_p5, %p38_p3  ;;  %s310_s20 = sshll.u32 %s528_s19, 3 }
   0xd   : > { %s311_s21 = sshll.u32 %s468_s12, 7  ;;  %s118_s25 = scalar_lea.vmem [#allocation2], %s310_s20 }
   0xe   : > { %s645_s18 = scalar_select %p523_p7, 1, 0 }
   0xf   : > { %s537_s24 = scalar_lea.hbm %s641_s0, %s311_s21  ;;  %s125_s26 = sshll.u32 %s118_s25, 4  ;;  %s541_s26 = int_to_ptr.vmem [resolvable:$true] %s125_s26 }
  0x10   : > { %p543_p8 = pnand %p331_p6, %p34_p4  ;;  %s115_s28 = scalar_lea.sflag [#allocation3], %s528_s19 }
  0x11   : > { %s370_s29 = scalar_lea.hbm %s537_s24, 128  ;;  %s375_s4 = scalar_lea.hbm %s641_s0, 256 }
  0x12   : > { %p371_p11 = scmp.ne.s32.totalorder %s537_s24, %s370_s29  ;;  %p372_p12 = pneg %p543_p8 }
  0x13   : > { %p376_p1 = scmp.lt.u32.totalorder %s537_s24, %s641_s0  ;;  %p377_p2 = scmp.lt.u32.totalorder %s375_s4, %s370_s29 }
  0x14   : > { %p373_p13 = pnand %p372_p12, %p371_p11  ;;  %p379_p4 = scmp.lt.u32.totalorder %s370_s29, %s537_s24 }
  0x15   : > { %p378_p3 = por %p377_p2, %p376_p1 }
  0x16   : > { %p374_p0 = pneg %p373_p13 }
  0x17   : > { %p380_p5 = por %p379_p4, %p378_p3 }
  0x19   : > { %p381_p6 = pnand %p380_p5, %p374_p0 }
  0x1b   : > { %384 = shalt.err (!%p381_p6)
}
  0x1c   : > { %s385_s7 = scalar_lea.vmem %s541_s26, 128  ;;  %s470_s8 = smov [#allocation2]  }
  0x1d   : > { %p386_p11 = scmp.ne.s32.totalorder %s541_s26, %s385_s7  ;;  %s390_s9 = sshll.u32 %s470_s8, 4  ;;  %s391_s9 = int_to_ptr.vmem [resolvable:$false] %s390_s9 }
  0x1e   : > { %s392_s15 = scalar_lea.vmem %s391_s9, 256  ;;  %p393_p10 = scmp.lt.s32.totalorder %s541_s26, %s391_s9 }
  0x1f   : > { %p388_p13 = pnand %p386_p11, %p372_p12  ;;  %p394_p1 = scmp.lt.s32.totalorder %s392_s15, %s385_s7 }
  0x21   : > { %p389_p9 = pneg %p388_p13  ;;  %p395_p2 = por %p394_p1, %p393_p10 }
  0x23   : > { %p396_p3 = pnand %p395_p2, %p389_p9 }
  0x25   : > { %399 = shalt.err (!%p396_p3)
}
  0x26   : > { %327 = dma.hbm_to_vmem [thread:$0]  (!%p543_p8), %s537_s24, 128, %s541_s26, %s115_s28  }
  0x27   : > { %p647_p0 = scmp.lt.s32.totalorder %s468_s12, 3  ;;  %p648_p4 = scmp.ge.s32.totalorder %s468_s12, 1 }
  0x28   : > { %s588_s25 = scalar_lea.hbm %s642_s1, %s311_s21  ;;  %s136_s29 = scalar_lea.vmem [#allocation4], %s310_s20 }
  0x29   : > { %p579_p5 = pnand %p648_p4, %p647_p0  ;;  %s143_s30 = sshll.u32 %s136_s29, 4  ;;  %s144_s30 = int_to_ptr.vmem [resolvable:$true] %s143_s30 }
  0x2a   : > { %s133_s24 = scalar_lea.sflag [#allocation5], %s528_s19  ;;  %s400_s26 = scalar_lea.hbm %s588_s25, 128 }
  0x2b   : > { %s649_s16 = scalar_select %p579_p5, 1, 0 }
  0x2c   : > { %p401_p9 = scmp.ne.s32.totalorder %s588_s25, %s400_s26  ;;  %s405_s21 = scalar_lea.hbm %s642_s1, 256 }
  0x2d   : > { %p406_p11 = scmp.lt.u32.totalorder %s588_s25, %s642_s1  ;;  %p407_p13 = scmp.lt.u32.totalorder %s405_s21, %s400_s26 }
  0x2e   : > { %p403_p10 = pnand %p401_p9, %p372_p12  ;;  %p409_p2 = scmp.lt.u32.totalorder %s400_s26, %s588_s25 }
  0x2f   : > { %p408_p1 = por %p407_p13, %p406_p11 }
  0x30   : > { %p404_p6 = pneg %p403_p10 }
  0x31   : > { %p410_p3 = por %p409_p2, %p408_p1 }
  0x33   : > { %p411_p0 = pnand %p410_p3, %p404_p6 }
  0x35   : > { %414 = shalt.err (!%p411_p0)
}
  0x36   : > { %s415_s19 = scalar_lea.vmem %s144_s30, 128  ;;  %s471_s20 = smov [#allocation4]  }
  0x37   : > { %p416_p4 = scmp.ne.s32.totalorder %s144_s30, %s415_s19  ;;  %s420_s5 = sshll.u32 %s471_s20, 4  ;;  %s421_s5 = int_to_ptr.vmem [resolvable:$false] %s420_s5 }
  0x38   : > { %s422_s6 = scalar_lea.vmem %s421_s5, 256  ;;  %p423_p7 = scmp.lt.s32.totalorder %s144_s30, %s421_s5 }
  0x39   : > { %p418_p9 = pnand %p416_p4, %p372_p12  ;;  %p424_p5 = scmp.lt.s32.totalorder %s422_s6, %s415_s19 }
  0x3b   : > { %p419_p10 = pneg %p418_p9  ;;  %p425_p11 = por %p424_p5, %p423_p7 }
  0x3d   : > { %p426_p13 = pnand %p425_p11, %p419_p10 }
  0x3f   : > { %429 = shalt.err (!%p426_p13)
}
  0x40   : > { %330 = dma.hbm_to_vmem [thread:$0]  (!%p543_p8), %s588_s25, 128, %s144_s30, %s133_s24  }
  0x41   : > { %p650_p6 = scmp.ne.s32.totalorder %s649_s16, 0 }
  0x42   : > { %s154_s7 = sand.u32 (!%p650_p6), 1, %s460_s10   ;;  %p651_p12 = scmp.ne.s32.totalorder (!%p650_p6), %s645_s18, 0 }
  0x43   : > { %152 = sbr.rel (%p650_p6) target bundleno = 395 (0x18b), region = 28  ;;  %s315_s8 = sshll.u32 (!%p650_p6), %s154_s7, 3 }
  0x44   : > { %s155_s9 = scalar_lea.sflag (!%p650_p6), [#allocation3], %s154_s7  ;;  %s158_s15 = scalar_lea.vmem (!%p650_p6), [#allocation2], %s315_s8 }
  0x4a   : > { %447 = dma.done.wait (%p651_p12), %s155_s9, 128  }
  0x4b   : > { %449 = vsyncadd (%p651_p12), %s155_s9, 4294967168  ;;  %s164_s22 = scalar_lea.sflag [#allocation5], %s154_s7  ;;  %s167_s23 = scalar_lea.vmem [#allocation4], %s315_s8 }
  0x4c   : > { %451 = dma.done.wait (%p651_p12), %s164_s22, 128  }
  0x4d   : > { %453 = vsyncadd (%p651_p12), %s164_s22, 4294967168  ;;  %v196_v0 = vld [vmem:[%s158_s15] sm:$0xff]  ;;  %v197_v1 = vld [vmem:[%s167_s23] sm:$0xff]  ;;  %p192_p7 = scmp.lt.s32.totalorder %s506_s13, 1  ;;  %vm217_vm0 = vcmask 7168  }
  0x4e   : > { %200 = vmax.xlane.f32.xlu0 %v196_v0  ;;  %v198_v2 = vmul.f32 1.442695, %v197_v1 }
  0x4f   : > { %s657_s13 = smov (!%p192_p7, %s506_s13), 1 }
  0x50   : > { %364 = vpow2.f32 %v198_v2  ;;  %s317_s18 = sshll.u32 %s657_s13, 3 }
  0x51   : > { %s195_s25 = scalar_lea.vmem %s643_s2, %s317_s18 }
  0x5a   : > { %v365_v3 = vpop.eup %364 }
  0x5b   : > { %213 = vadd.xlane.f32.xlu1 %v365_v3 }
  0xdb   : > { %v201_v4 = vpop.xlane.xlu0 %200 }
  0xdc   : > { %v202_v5 = vsub.f32 %v196_v0, %v201_v4 }
  0xde   : > { %v203_v6 = vmul.f32 1.442695, %v202_v5  ;;  %v209_v7 = vsub.f32 %v197_v1, %v202_v5 }
  0xe0   : > { %366 = vpow2.f32 %v203_v6  ;;  %v210_v8 = vmul.f32 %v365_v3, %v209_v7 }
  0xe2   : > { %211 = vadd.xlane.f32.xlu1 %v210_v8 }
  0xe8   : > { %v214_v11 = vpop.xlane.xlu1 %213 }
  0xea   : > { %v367_v9 = vpop.eup %366 }
  0xeb   : > { %205 = vadd.xlane.f32.xlu0 %v367_v9 }
 0x16f   : > { %v212_v15 = vpop.xlane.xlu1 %211 }
 0x178   : > { %v206_v10 = vpop.xlane.xlu0 %205 }
 0x179   : > { %368 = vlog2.f32 %v206_v10 }
 0x183   : > { %v369_v12 = vpop.eup %368 }
 0x184   : > { %v208_v13 = vmul.f32 0.6931472, %v369_v12 }
 0x186   : > { %v215_v14 = vmul.f32 %v214_v11, %v208_v13 }
 0x188   : > { %v216_v16 = vadd.f32 %v215_v14, %v212_v15 }
 0x18a   : > { %218 = vst.msk [vmem:[%s195_s25] sm:$0xff] %vm217_vm0, %v216_v16 }
 0x18b PF: > { %p15_p8 = scmp.ge.s32.totalorder %s509_s14, 4   ;;  %s652_s9 = smov %s460_s10 }
 0x18c   : > { %s653_s10 = smov %s464_s11  ;;  %s654_s11 = smov %s519_s17 }
 0x18d   : > { %s655_s12 = smov %s509_s14  ;;  %17 = sbr.rel (!%p15_p8) target bundleno = 5 (0x5), region = 81 }
 0x194   :  { %238 = vsyncpa [#allocation3], 1 }
 0x195   :  { %240 = vsyncpa [#allocation3 + $0x1], 1 }
 0x196   :  { %241 = vsyncpa [#allocation5], 1 }
 0x197   :  { %243 = vsyncpa [#allocation5 + $0x1], 1 }

</bundles_post_ra>
